<compile_context>
chip_gen: v6e
topology: v6e:2x2x1
jax: 0.10.0
libtpu: 0.0.40
codegen_flags: <defaults>
</compile_context>

<pallas_src>
import functools

import jax
import jax.numpy as jnp
from jax.experimental import pallas as pl
from jax.experimental.pallas import tpu as pltpu

M_MARGIN = 0.2
S_SCALE = 10.0
_NEG_FILL = -1e30  # finite "-inf": exp underflows to exactly 0, never wins a max


def _round_up(a: int, b: int) -> int:
    return ((a + b - 1) // b) * b


def _margin_loss_kernel(x_ref, t_ref, loss_ref, acc_ref, *, n_true, tn, ms):
    i = pl.program_id(0)

    @pl.when(i == 0)
    def _init():
        acc_ref[0] = jnp.float32(0.0)

    x = x_ref[...]                                   # (tn, c_pad) f32
    t = t_ref[...]                                   # (tn, 1)     i32

    # one-hot mask of the target class per row (== scatter_ of 1s along dim 1)
    col = jax.lax.broadcasted_iota(jnp.int32, x.shape, 1)
    mask = col == t                                  # (tn, c_pad) bool

    # subtract margin*scale at the target logit only
    out = jnp.where(mask, x - ms, x)                 # (tn, c_pad)

    # numerically stable cross entropy without materializing log-softmax:
    #   per_sample = logsumexp(out) - out[target] = (mx + lse) - tgt
    mx = jnp.max(out, axis=1, keepdims=True)                        # (tn, 1)
    lse = jnp.log(jnp.sum(jnp.exp(out - mx), axis=1, keepdims=True))  # (tn, 1)
    tgt = jnp.sum(jnp.where(mask, out, 0.0), axis=1, keepdims=True)   # (tn, 1)
    per_sample = (mx + lse) - tgt                                     # (tn, 1)

    # mask out padded rows of the last partial tile
    row = i * tn + jax.lax.broadcasted_iota(jnp.int32, per_sample.shape, 0)
    per_sample = jnp.where(row < n_true, per_sample, 0.0)

    acc_ref[0] += jnp.sum(per_sample)

    @pl.when(i == pl.num_programs(0) - 1)
    def _finalize():
        loss_ref[0] = acc_ref[0] / jnp.float32(n_true)  # mean over TRUE N


def margin_loss(x, target, *, m=M_MARGIN, s=S_SCALE,
                target_tile_bytes=2 * 1024 * 1024):
    """x: (N, C) float logits; target: (N,) int class indices. Returns scalar loss."""
    n, c = x.shape

    # lane-dense class dim: pad to a multiple of 128
    c_pad = _round_up(max(c, 128), 128)

    # pick the largest row tile (multiple of 8) within ~target_tile_bytes of
    # VMEM per x buffer (BlockSpec double-buffers, so budget ~2x this per input)
    rows = max(8, (target_tile_bytes // (4 * c_pad)) // 8 * 8)
    tn = min(rows, _round_up(n, 8))
    n_pad = _round_up(n, tn)

    x_p = x.astype(jnp.float32)
    if n_pad > n:                                   # pad rows with zeros (masked later)
        x_p = jnp.pad(x_p, ((0, n_pad - n), (0, 0)))
    if c_pad > c:                                   # pad classes with big negative
        x_p = jnp.pad(x_p, ((0, 0), (0, c_pad - c)), constant_values=_NEG_FILL)

    t_p = target.astype(jnp.int32)
    if n_pad > n:
        t_p = jnp.pad(t_p, (0, n_pad - n))
    t2d = t_p.reshape(n_pad, 1)

    kernel = functools.partial(
        _margin_loss_kernel, n_true=n, tn=tn, ms=float(m) * float(s))

    out = pl.pallas_call(
        kernel,
        out_shape=jax.ShapeDtypeStruct((1,), jnp.float32),
        grid=(n_pad // tn,),
        in_specs=[
            pl.BlockSpec((tn, c_pad), lambda i: (i, 0)),
            pl.BlockSpec((tn, 1), lambda i: (i, 0)),
        ],
        out_specs=pl.BlockSpec(memory_space=pltpu.MemorySpace.SMEM),
        scratch_shapes=[pltpu.SMEM((1,), jnp.float32)],
        compiler_params=pltpu.CompilerParams(
            dimension_semantics=("arbitrary",),     # scalar output is an accumulator
            vmem_limit_bytes=32 * 1024 * 1024,      # headroom on v5e/v6e/v7x alike
        ),
    )(x_p, t2d)
    return out[0]


def margin_loss_ref(x, target, m=M_MARGIN, s=S_SCALE):
    """Pure-JAX reference (mirrors the PyTorch forward)."""
    mask = jax.nn.one_hot(target, x.shape[1], dtype=jnp.bool_)
    out = jnp.where(mask, x - m * s, x)
    logp = jax.nn.log_softmax(out, axis=1)
    return -jnp.mean(jnp.take_along_axis(logp, target[:, None], axis=1))


if __name__ == "__main__":
    key = jax.random.PRNGKey(0)
    kx, kt = jax.random.split(key)
    # deliberately uneven shapes: exercise both row padding (N) and lane padding (C)
    N, C = 13, 40
    x = jax.random.normal(kx, (N, C), dtype=jnp.float32) * 3.0
    target = jax.random.randint(kt, (N,), 0, C, dtype=jnp.int32)

    ref = jax.block_until_ready(margin_loss_ref(x, target))

    # default (single tile covers the whole padded batch)
    loss = jax.block_until_ready(margin_loss(x, target))
    assert jnp.allclose(loss, ref, rtol=1e-5, atol=1e-5), (loss, ref)

    # tiny tile -> multiple grid steps: exercises init/accumulate/finalize path
    loss_multi = jax.block_until_ready(
        margin_loss(x, target, target_tile_bytes=4096))
    assert jnp.allclose(loss_multi, ref, rtol=1e-5, atol=1e-5), (loss_multi, ref)

    print("KERNEL_OK")
</pallas_src>

<mosaic_0001>
module attributes {stable_mosaic.version = 11 : i64} {
  func.func @_margin_loss_kernel(%arg0: i32, %arg1: memref<16x128xf32, #tpu.memory_space<vmem>>, %arg2: memref<16x1xi32, #tpu.memory_space<vmem>>, %arg3: memref<1xf32, #tpu.memory_space<smem>>, %arg4: memref<1xf32, #tpu.memory_space<smem>>) attributes {dimension_semantics = [#tpu.dimension_semantics<arbitrary>], iteration_bounds = array<i64: 1>, scalar_prefetch = 0 : i64, scratch_operands = 1 : i64, tpu.core_type = #tpu.core_type<tc>, window_params = [{transform_indices = @transform_0, window_bounds = array<i64: 16, 128>}, {transform_indices = @transform_1, window_bounds = array<i64: 16, 1>}, {transform_indices = @transform_2, window_bounds = array<i64: 1>}]} {
    %c0_i32 = arith.constant 0 : i32
    %0 = arith.cmpi eq, %arg0, %c0_i32 : i32
    %1 = arith.extui %0 : i1 to i32
    %c0_i32_0 = arith.constant 0 : i32
    %2 = arith.cmpi ne, %1, %c0_i32_0 : i32
    scf.if %2 {
      %cst_14 = arith.constant 0.000000e+00 : f32
      %c0_15 = arith.constant 0 : index
      %43 = memref.load %arg4[%c0_15] : memref<1xf32, #tpu.memory_space<smem>>
      memref.store %cst_14, %arg4[%c0_15] : memref<1xf32, #tpu.memory_space<smem>>
    } else {
    }
    %c0 = arith.constant 0 : index
    %c0_1 = arith.constant 0 : index
    %3 = vector.load %arg1[%c0, %c0_1] : memref<16x128xf32, #tpu.memory_space<vmem>>, vector<16x128xf32>
    %c0_2 = arith.constant 0 : index
    %c0_3 = arith.constant 0 : index
    %4 = vector.load %arg2[%c0_2, %c0_3] : memref<16x1xi32, #tpu.memory_space<vmem>>, vector<16x1xi32>
    %5 = tpu.iota {dimensions = array<i32: 1>} : vector<16x128xi32>
    %6 = vector.broadcast %4 : vector<16x1xi32> to vector<16x128xi32>
    %7 = arith.cmpi eq, %5, %6 : vector<16x128xi32>
    %cst = arith.constant 2.000000e+00 : f32
    %8 = vector.broadcast %cst : f32 to vector<16x128xf32>
    %9 = arith.subf %3, %8 : vector<16x128xf32>
    %10 = arith.select %7, %9, %3 : vector<16x128xi1>, vector<16x128xf32>
    %cst_4 = arith.constant dense<0xFF800000> : vector<16xf32>
    %11 = vector.multi_reduction <maximumf>, %10, %cst_4 [1] : vector<16x128xf32> to vector<16xf32>
    %12 = vector.shape_cast %11 : vector<16xf32> to vector<16x1xf32>
    %13 = vector.broadcast %12 : vector<16x1xf32> to vector<16x128xf32>
    %14 = arith.subf %10, %13 : vector<16x128xf32>
    %15 = math.exp %14 : vector<16x128xf32>
    %cst_5 = arith.constant dense<0.000000e+00> : vector<16xf32>
    %16 = vector.multi_reduction <add>, %15, %cst_5 [1] : vector<16x128xf32> to vector<16xf32>
    %17 = vector.shape_cast %16 : vector<16xf32> to vector<16x1xf32>
    %18 = math.log %17 : vector<16x1xf32>
    %cst_6 = arith.constant 0.000000e+00 : f32
    %19 = vector.broadcast %cst_6 : f32 to vector<16x128xf32>
    %20 = arith.select %7, %10, %19 : vector<16x128xi1>, vector<16x128xf32>
    %cst_7 = arith.constant dense<0.000000e+00> : vector<16xf32>
    %21 = vector.multi_reduction <add>, %20, %cst_7 [1] : vector<16x128xf32> to vector<16xf32>
    %22 = vector.shape_cast %21 : vector<16xf32> to vector<16x1xf32>
    %23 = arith.addf %12, %18 : vector<16x1xf32>
    %24 = arith.subf %23, %22 : vector<16x1xf32>
    %c16_i32 = arith.constant 16 : i32
    %25 = arith.muli %arg0, %c16_i32 : i32
    %26 = tpu.iota {dimensions = array<i32: 0>} : vector<16x1xi32>
    %27 = vector.broadcast %25 : i32 to vector<16x1xi32>
    %28 = arith.addi %27, %26 : vector<16x1xi32>
    %c13_i32 = arith.constant 13 : i32
    %29 = vector.broadcast %c13_i32 : i32 to vector<16x1xi32>
    %30 = arith.cmpi slt, %28, %29 : vector<16x1xi32>
    %cst_8 = arith.constant 0.000000e+00 : f32
    %31 = vector.broadcast %cst_8 : f32 to vector<16x1xf32>
    %32 = arith.select %30, %24, %31 : vector<16x1xi1>, vector<16x1xf32>
    %c0_9 = arith.constant 0 : index
    %33 = memref.load %arg4[%c0_9] : memref<1xf32, #tpu.memory_space<smem>>
    %34 = vector.shape_cast %32 : vector<16x1xf32> to vector<1x16x1xf32>
    %cst_10 = arith.constant dense<0.000000e+00> : vector<1xf32>
    %35 = vector.multi_reduction <add>, %34, %cst_10 [1, 2] : vector<1x16x1xf32> to vector<1xf32>
    %36 = vector.shape_cast %35 : vector<1xf32> to vector<1x1x1xf32>
    %37 = vector.extract %36[0, 0, 0] : f32 from vector<1x1x1xf32>
    %38 = arith.addf %33, %37 : f32
    %c0_11 = arith.constant 0 : index
    %39 = memref.load %arg4[%c0_11] : memref<1xf32, #tpu.memory_space<smem>>
    memref.store %38, %arg4[%c0_11] : memref<1xf32, #tpu.memory_space<smem>>
    %c0_i32_12 = arith.constant 0 : i32
    %40 = arith.cmpi eq, %arg0, %c0_i32_12 : i32
    %41 = arith.extui %40 : i1 to i32
    %c0_i32_13 = arith.constant 0 : i32
    %42 = arith.cmpi ne, %41, %c0_i32_13 : i32
    scf.if %42 {
      %c0_14 = arith.constant 0 : index
      %43 = memref.load %arg4[%c0_14] : memref<1xf32, #tpu.memory_space<smem>>
      %cst_15 = arith.constant 1.300000e+01 : f32
      %44 = arith.divf %43, %cst_15 : f32
      %c0_16 = arith.constant 0 : index
      %45 = memref.load %arg3[%c0_16] : memref<1xf32, #tpu.memory_space<smem>>
      memref.store %44, %arg3[%c0_16] : memref<1xf32, #tpu.memory_space<smem>>
    } else {
    }
    return
  }
  func.func @transform_0(%arg0: i32) -> (i32, i32) {
    %c0_i32 = arith.constant 0 : i32
    %c0_i32_0 = arith.constant 0 : i32
    return %arg0, %c0_i32 : i32, i32
  }
  func.func @transform_1(%arg0: i32) -> (i32, i32) {
    %c0_i32 = arith.constant 0 : i32
    %c0_i32_0 = arith.constant 0 : i32
    return %arg0, %c0_i32 : i32, i32
  }
  func.func @transform_2(%arg0: i32) -> i32 {
    %c0_i32 = arith.constant 0 : i32
    %c0_i32_0 = arith.constant 0 : i32
    return %c0_i32 : i32
  }
}

</mosaic_0001>

<bundles_post_ra>
// kernel: tpu_custom_call.1
= control target key start
LH: loop header
LB: loop body
LE: loop exit
PB: predicated region body
PF: predicated region fallthrough
CT: control target
= control target key end

     0   :  { %v139_v1 = vmov 0   ;;  %s171_s0 = inlined_call_operand.vmem [shape: f32[16,128], index: 0, kind: input, shape index: {}]   ;;  %s172_s1 = inlined_call_operand.vmem [shape: s32[16,1], index: 1, kind: input, shape index: {}]   ;;  %s173_s2 = inlined_call_operand.hbm [shape: f32[1], index: 2, kind: output, shape index: {}]  }
   0x1   :  { %v21_v0 = vld [vmem:[%s172_s1 + $0x8] sm:$0xff]  ;;  %120 = vset.pattern.permute.xlu0 %v139_v1 }
   0x2   :  { %7 = vsyncpa [#allocation4], 0  ;;  %28 = vperm.xlu0 %120, %v21_v0   ;;  %v20_v2 = vld [vmem:[%s172_s1] sm:$0xff]  ;;  %v22_v3 = vlaneseq  ;;  %v19_v4 = vld [vmem:[%s171_s0 + $0x8] sm:$0xff]  ;;  %vm76_vm3 = vcmask 7168   ;;  %s140_s17 = smov [#allocation3]  }
   0x3   :  { %v115_v6 = vadd.f32 -2.0, %v19_v4  ;;  %v18_v7 = vld [vmem:[%s171_s0] sm:$0xff] }
   0x4   :  { %v23_v5 = vand.u32 127, %v22_v3  ;;  %v114_v10 = vadd.f32 -2.0, %v18_v7  ;;  %v66_v25 = vshrl.u32 %v22_v3, 7 }
   0x6   :  { %25 = vperm.xlu0 %120, %v20_v2   ;;  %v67_v28 = vadd.s32 8, %v66_v25 }
   0x8   :  { %vm72_vm2 = vcmp.lt.s32.totalorder %v67_v28, 13 }
  0x7d   :  { %v29_v8 = vpop.permute.xlu0 %28 }
  0x7e   :  { %vm31_vm0 = vcmp.eq.s32.totalorder %v23_v5, %v29_v8 }
  0x7f   :  { %v35_v9 = vsel %vm31_vm0, %v115_v6, %v19_v4  ;;  %v55_v11 = vsel %vm31_vm0, %v115_v6, 0.0 }
  0x80   :  { %38 = vmax.xlane.f32.xlu1 %v35_v9 }
  0x81   :  { %v26_v12 = vpop.permute.xlu0 %25 }
  0x82   :  { %vm30_vm1 = vcmp.eq.s32.totalorder %v23_v5, %v26_v12 }
  0x83   :  { %v34_v13 = vsel %vm30_vm1, %v114_v10, %v18_v7  ;;  %v54_v14 = vsel %vm30_vm1, %v114_v10, 0.0 }
  0x84   :  { %36 = vmax.xlane.f32.xlu1 %v34_v13 }
 0x109   :  { %v39_v15 = vpop.xlane.xlu1 %38 }
 0x10a   :  { %v41_v16 = vsub.f32 %v35_v9, %v39_v15 }
 0x10c   :  { %v44_v17 = vmul.f32 1.442695, %v41_v16 }
 0x10d   :  { %v37_v18 = vpop.xlane.xlu1 %36 }
 0x10e   :  { %121 = vpow2.f32 %v44_v17  ;;  %v40_v19 = vsub.f32 %v34_v13, %v37_v18 }
 0x110   :  { %v42_v20 = vmul.f32 1.442695, %v40_v19 }
 0x112   :  { %123 = vpow2.f32 %v42_v20 }
 0x11b   :  { %v122_v21 = vpop.eup %121 }
 0x11c   :  { %48 = vadd.xlane.f32.xlu0 %v122_v21 }
 0x11f   :  { %v124_v22 = vpop.eup %123 }
 0x120   :  { %46 = vadd.xlane.f32.xlu1 %v124_v22 }
 0x124   :  { %58 = vadd.xlane.f32.xlu1 %v55_v11 }
 0x128   :  { %56 = vadd.xlane.f32.xlu1 %v54_v14 }
 0x1a5   :  { %v49_v23 = vpop.xlane.xlu0 %48 }
 0x1a6   :  { %125 = vlog2.f32 %v49_v23 }
 0x1a9   :  { %v47_v24 = vpop.xlane.xlu1 %46 }
 0x1aa   :  { %127 = vlog2.f32 %v47_v24 }
 0x1ad   :  { %v59_v29 = vpop.xlane.xlu1 %58 }
 0x1b1   :  { %v57_v36 = vpop.xlane.xlu1 %56 }
 0x1b3   :  { %v126_v26 = vpop.eup %125 }
 0x1b4   :  { %v53_v27 = vmul.f32 0.6931472, %v126_v26 }
 0x1b6   :  { %v61_v30 = vadd.f32 %v53_v27, %v39_v15 }
 0x1b7   :  { %v128_v31 = vpop.eup %127 }
 0x1b8   :  { %v51_v32 = vmul.f32 0.6931472, %v128_v31  ;;  %v63_v33 = vsub.f32 %v61_v30, %v59_v29 }
 0x1ba   :  { %v60_v34 = vadd.f32 %v51_v32, %v37_v18  ;;  %v74_v35 = vsel %vm72_vm2, %v63_v33, 0.0 }
 0x1bb   :  { %v78_v39 = vsel %vm76_vm3, %v74_v35, 0.0 }
 0x1bc   :  { %v62_v37 = vsub.f32 %v60_v34, %v57_v36 }
 0x1be   :  { %v77_v38 = vsel %vm76_vm3, %v62_v37, 0.0 }
 0x1bf   :  { %v79_v40 = vadd.f32 %v78_v39, %v77_v38 }
 0x1c1   :  { %80 = vadd.xlane.f32.xlu1 %v79_v40 }
 0x24a   :  { %v81_v41 = vpop.xlane.xlu1 %80 }
 0x24b   :  { %v82_v42 = vrot.slane %v81_v41, 4 }
 0x24d   :  { %v83_v43 = vadd.f32 %v82_v42, %v81_v41 }
 0x24f   :  { %v84_v44 = vrot.slane %v83_v43, 2 }
 0x251   :  { %v85_v45 = vadd.f32 %v84_v44, %v83_v43 }
 0x253   :  { %v86_v46 = vrot.slane %v85_v45, 1 }
 0x255   :  { %v87_v47 = vadd.f32 %v86_v46, %v85_v45 }
 0x257   :  { %116 = vpush %v87_v47 }
 0x288   :  { %s117_s0 = spop %116 }
 0x289   :  { %s98_s1 = smul.f32 0.07692308, %s117_s0 }
 0x28b   :  { %100 = sst [smem:[#allocation3]] %s98_s1 }
 0x28c   :  { %108 = dma.smem_to_hbm %s140_s17, 16, %s173_s2, [#allocation4]  }
 0x28d   :  { %137 = dma.done.wait [#allocation4], 16  }
 0x28e   :  { %138 = vsyncadd [#allocation4], 4294967280 }
 0x28f   :  { %112 = sfence }
 0x290   :  { %113 = vsyncpa [#allocation4], 1 }

</bundles_post_ra>
